<compile_context>
chip_gen: v7x
topology: tpu7x:2x2x1
jax: 0.10.0
libtpu: 0.0.40
codegen_flags: <defaults>
</compile_context>

<pallas_src>
import jax
import jax.numpy as jnp
from jax.experimental import pallas as pl
from jax.experimental.pallas import tpu as pltpu


def _round_up(n, m):
    return ((n + m - 1) // m) * m


def _sigmoid(z):
    # tanh-based sigmoid: transcendental goes to the EUP, no reciprocal
    # refinement on the VPU. Mathematically identical to 1/(1+exp(-z)).
    return 0.5 * jnp.tanh(0.5 * z) + 0.5


def mlp_kernel(x_ref, w1_ref, b1_ref, w2_ref, b2_ref, w3_ref, b3_ref, o_ref):
    """Fused forward for one (TB, 64) batch tile.

    Output block is (1, 1, TB): batch sits on the lane axis (lane-dense store).
    """
    x = x_ref[...].astype(jnp.float32)                                # (TB, 64)

    # Layer 1: (TB,64) @ (64,32) + (1,32)
    v = _sigmoid(jnp.dot(x, w1_ref[...], preferred_element_type=jnp.float32)
                 + b1_ref[...])
    # Layer 2: (TB,32) @ (32,16) + (1,16)
    h = _sigmoid(jnp.dot(v, w2_ref[...], preferred_element_type=jnp.float32)
                 + b2_ref[...])
    # Layer 3, transposed so the result lands batch-on-lanes:
    #   (1,16) @ (16,TB) + (1,1) -> (1,TB)
    z = jnp.dot(w3_ref[...], h.T, preferred_element_type=jnp.float32) + b3_ref[...]
    o_ref[0] = _sigmoid(z).astype(o_ref.dtype)


def _resident(a):
    # Full-array block with a constant index_map: fetched once, stays in VMEM.
    return pl.BlockSpec(a.shape, lambda i: (0, 0))


def simple_classification_net(x, params, *, tb=2048):
    """x: (B, 64) float32 -> (B, 1) float32."""
    B, feat = x.shape
    assert feat == 64, "SimpleClassificationNet expects 64 input features"
    w1, b1, w2, b2, w3, b3 = (params["w1"], params["b1"], params["w2"],
                              params["b2"], params["w3"], params["b3"])

    # Batch tile: multiple of 8 (sublane). Default 2048 (multiple of 128 so the
    # lane-dense output stays unmasked); 2 buffers * TB*64*4B = 1 MiB at
    # TB=2048, comfortably inside every generation's scoped-VMEM default.
    TB = min(tb, _round_up(B, 8))
    num_tiles = pl.cdiv(B, TB)

    out = pl.pallas_call(
        mlp_kernel,
        out_shape=jax.ShapeDtypeStruct((num_tiles, 1, TB), jnp.float32),
        grid_spec=pltpu.PrefetchScalarGridSpec(
            num_scalar_prefetch=0,
            grid=(num_tiles,),
            in_specs=[
                pl.BlockSpec((TB, 64), lambda i: (i, 0)),   # streamed batch tile
                _resident(w1), _resident(b1),
                _resident(w2), _resident(b2),
                _resident(w3), _resident(b3),
            ],
            out_specs=pl.BlockSpec((1, 1, TB), lambda i: (i, 0, 0)),
        ),
        compiler_params=pltpu.CompilerParams(
            # Batch tiles are independent: lets v7x shard the grid over both
            # TensorCores; no effect on single-core v5e/v6e.
            dimension_semantics=("parallel",),
        ),
    )(x, w1, b1, w2, b2, w3, b3)

    # (tiles, 1, TB) slab with batch on lanes -> (B, 1). Any padded rows from a
    # ragged last tile are dropped by the slice.
    return out.reshape(num_tiles * TB, 1)[:B]


def init_params(key):
    """Deterministic init matching nn.Linear shapes; w1/w2 stored as (in, out)."""
    ks = jax.random.split(key, 6)

    def uniform_linear(kw, kb, fan_in, fan_out):
        # Mimic PyTorch's U(-1/sqrt(fan_in), 1/sqrt(fan_in)) init.
        bound = 1.0 / jnp.sqrt(jnp.float32(fan_in))
        w = jax.random.uniform(kw, (fan_in, fan_out), jnp.float32, -bound, bound)
        b = jax.random.uniform(kb, (1, fan_out), jnp.float32, -bound, bound)
        return w, b

    w1, b1 = uniform_linear(ks[0], ks[1], 64, 32)
    w2, b2 = uniform_linear(ks[2], ks[3], 32, 16)
    w3, b3 = uniform_linear(ks[4], ks[5], 16, 1)
    # Layer-3 weight kept as a (1, 16) row (PyTorch's (out,in) layout) so the
    # kernel can do the transposed matmul (1,16)@(16,TB) directly.
    return {"w1": w1, "b1": b1, "w2": w2, "b2": b2, "w3": w3.T, "b3": b3}


def reference_forward(x, p):
    v = jax.nn.sigmoid(x @ p["w1"] + p["b1"])
    h = jax.nn.sigmoid(v @ p["w2"] + p["b2"])
    return jax.nn.sigmoid(h @ p["w3"].T + p["b3"])


if __name__ == "__main__":
    key = jax.random.PRNGKey(0)
    k_param, k_x = jax.random.split(key)
    params = init_params(k_param)

    # Small demo batch (launch overhead dominates here; tiling pays off at
    # large B, where TB defaults to 2048 rows per grid step).
    x = jax.random.normal(k_x, (8, 64), dtype=jnp.float32)
    y = simple_classification_net(x, params)
    jax.block_until_ready(y)
    y_ref = reference_forward(x, params)
    assert y.shape == (8, 1)
    assert jnp.allclose(y, y_ref, atol=1e-5, rtol=1e-5), "mismatch vs reference (B=8)"

    # Exercise the multi-tile pipelined path with a forced small tile.
    x2 = jax.random.normal(jax.random.PRNGKey(1), (64, 64), dtype=jnp.float32)
    y2 = simple_classification_net(x2, params, tb=16)     # 4 grid steps
    jax.block_until_ready(y2)
    y2_ref = reference_forward(x2, params)
    assert y2.shape == (64, 1)
    assert jnp.allclose(y2, y2_ref, atol=1e-5, rtol=1e-5), "mismatch vs reference (tiled)"

    print("KERNEL_OK")
</pallas_src>

<mosaic_0001>
module attributes {stable_mosaic.version = 11 : i64} {
  func.func @mlp_kernel(%arg0: i32, %arg1: memref<8x64xf32, #tpu.memory_space<vmem>>, %arg2: memref<64x32xf32, #tpu.memory_space<vmem>>, %arg3: memref<1x32xf32, #tpu.memory_space<vmem>>, %arg4: memref<32x16xf32, #tpu.memory_space<vmem>>, %arg5: memref<1x16xf32, #tpu.memory_space<vmem>>, %arg6: memref<1x16xf32, #tpu.memory_space<vmem>>, %arg7: memref<1x1xf32, #tpu.memory_space<vmem>>, %arg8: memref<1x1x8xf32, #tpu.memory_space<vmem>>) attributes {dimension_semantics = [#tpu.dimension_semantics<parallel>], iteration_bounds = array<i64: 1>, scalar_prefetch = 0 : i64, scratch_operands = 0 : i64, tpu.core_type = #tpu.core_type<tc>, window_params = [{transform_indices = @transform_0, window_bounds = array<i64: 8, 64>}, {pipeline_mode = #tpu.pipeline_mode<synchronous>, transform_indices = @transform_1, window_bounds = array<i64: 64, 32>}, {pipeline_mode = #tpu.pipeline_mode<synchronous>, transform_indices = @transform_2, window_bounds = array<i64: 1, 32>}, {pipeline_mode = #tpu.pipeline_mode<synchronous>, transform_indices = @transform_3, window_bounds = array<i64: 32, 16>}, {pipeline_mode = #tpu.pipeline_mode<synchronous>, transform_indices = @transform_4, window_bounds = array<i64: 1, 16>}, {pipeline_mode = #tpu.pipeline_mode<synchronous>, transform_indices = @transform_5, window_bounds = array<i64: 1, 16>}, {pipeline_mode = #tpu.pipeline_mode<synchronous>, transform_indices = @transform_6, window_bounds = array<i64: 1, 1>}, {transform_indices = @transform_7, window_bounds = array<i64: 1, 1, 8>}]} {
    %c0 = arith.constant 0 : index
    %c0_0 = arith.constant 0 : index
    %0 = vector.load %arg1[%c0, %c0_0] : memref<8x64xf32, #tpu.memory_space<vmem>>, vector<8x64xf32>
    %c0_1 = arith.constant 0 : index
    %c0_2 = arith.constant 0 : index
    %1 = vector.load %arg2[%c0_1, %c0_2] : memref<64x32xf32, #tpu.memory_space<vmem>>, vector<64x32xf32>
    %cst = arith.constant dense<0.000000e+00> : vector<8x32xf32>
    %2 = tpu.matmul %0, %1, %cst {dimension_numbers = #tpu.dot_dimension_numbers<[1], [0], [0], [1], [0, 0, 1, 1], [], []>} : vector<8x64xf32>, vector<64x32xf32>, vector<8x32xf32> -> vector<8x32xf32>
    %c0_3 = arith.constant 0 : index
    %c0_4 = arith.constant 0 : index
    %3 = vector.load %arg3[%c0_3, %c0_4] : memref<1x32xf32, #tpu.memory_space<vmem>>, vector<1x32xf32>
    %4 = vector.broadcast %3 : vector<1x32xf32> to vector<8x32xf32>
    %5 = arith.addf %2, %4 : vector<8x32xf32>
    %cst_5 = arith.constant 5.000000e-01 : f32
    %6 = vector.broadcast %cst_5 : f32 to vector<8x32xf32>
    %7 = arith.mulf %6, %5 : vector<8x32xf32>
    %8 = math.tanh %7 : vector<8x32xf32>
    %cst_6 = arith.constant 5.000000e-01 : f32
    %9 = vector.broadcast %cst_6 : f32 to vector<8x32xf32>
    %10 = arith.mulf %9, %8 : vector<8x32xf32>
    %cst_7 = arith.constant 5.000000e-01 : f32
    %11 = vector.broadcast %cst_7 : f32 to vector<8x32xf32>
    %12 = arith.addf %10, %11 : vector<8x32xf32>
    %c0_8 = arith.constant 0 : index
    %c0_9 = arith.constant 0 : index
    %13 = vector.load %arg4[%c0_8, %c0_9] : memref<32x16xf32, #tpu.memory_space<vmem>>, vector<32x16xf32>
    %cst_10 = arith.constant dense<0.000000e+00> : vector<8x16xf32>
    %14 = tpu.matmul %12, %13, %cst_10 {dimension_numbers = #tpu.dot_dimension_numbers<[1], [0], [0], [1], [0, 0, 1, 1], [], []>} : vector<8x32xf32>, vector<32x16xf32>, vector<8x16xf32> -> vector<8x16xf32>
    %c0_11 = arith.constant 0 : index
    %c0_12 = arith.constant 0 : index
    %15 = vector.load %arg5[%c0_11, %c0_12] : memref<1x16xf32, #tpu.memory_space<vmem>>, vector<1x16xf32>
    %16 = vector.broadcast %15 : vector<1x16xf32> to vector<8x16xf32>
    %17 = arith.addf %14, %16 : vector<8x16xf32>
    %cst_13 = arith.constant 5.000000e-01 : f32
    %18 = vector.broadcast %cst_13 : f32 to vector<8x16xf32>
    %19 = arith.mulf %18, %17 : vector<8x16xf32>
    %20 = math.tanh %19 : vector<8x16xf32>
    %cst_14 = arith.constant 5.000000e-01 : f32
    %21 = vector.broadcast %cst_14 : f32 to vector<8x16xf32>
    %22 = arith.mulf %21, %20 : vector<8x16xf32>
    %cst_15 = arith.constant 5.000000e-01 : f32
    %23 = vector.broadcast %cst_15 : f32 to vector<8x16xf32>
    %24 = arith.addf %22, %23 : vector<8x16xf32>
    %c0_16 = arith.constant 0 : index
    %c0_17 = arith.constant 0 : index
    %25 = vector.load %arg6[%c0_16, %c0_17] : memref<1x16xf32, #tpu.memory_space<vmem>>, vector<1x16xf32>
    %26 = tpu.transpose %24, [1, 0] : vector<8x16xf32> -> vector<16x8xf32>
    %cst_18 = arith.constant dense<0.000000e+00> : vector<1x8xf32>
    %27 = tpu.matmul %25, %26, %cst_18 {dimension_numbers = #tpu.dot_dimension_numbers<[1], [0], [0], [1], [0, 0, 1, 1], [], []>} : vector<1x16xf32>, vector<16x8xf32>, vector<1x8xf32> -> vector<1x8xf32>
    %c0_19 = arith.constant 0 : index
    %c0_20 = arith.constant 0 : index
    %28 = vector.load %arg7[%c0_19, %c0_20] : memref<1x1xf32, #tpu.memory_space<vmem>>, vector<1x1xf32>
    %29 = vector.broadcast %28 : vector<1x1xf32> to vector<1x8xf32>
    %30 = arith.addf %27, %29 : vector<1x8xf32>
    %cst_21 = arith.constant 5.000000e-01 : f32
    %31 = vector.broadcast %cst_21 : f32 to vector<1x8xf32>
    %32 = arith.mulf %31, %30 : vector<1x8xf32>
    %33 = math.tanh %32 : vector<1x8xf32>
    %cst_22 = arith.constant 5.000000e-01 : f32
    %34 = vector.broadcast %cst_22 : f32 to vector<1x8xf32>
    %35 = arith.mulf %34, %33 : vector<1x8xf32>
    %cst_23 = arith.constant 5.000000e-01 : f32
    %36 = vector.broadcast %cst_23 : f32 to vector<1x8xf32>
    %37 = arith.addf %35, %36 : vector<1x8xf32>
    %c0_24 = arith.constant 0 : index
    %c0_25 = arith.constant 0 : index
    %c0_26 = arith.constant 0 : index
    %38 = vector.load %arg8[%c0_24, %c0_25, %c0_26] : memref<1x1x8xf32, #tpu.memory_space<vmem>>, vector<1x1x8xf32>
    %39 = vector.shape_cast %38 : vector<1x1x8xf32> to vector<1x8xf32>
    %40 = vector.shape_cast %37 : vector<1x8xf32> to vector<1x1x8xf32>
    tpu.vector_store %arg8[%c0_24, %c0_25, %c0_26], %40 {strides = array<i32>} : memref<1x1x8xf32, #tpu.memory_space<vmem>>, vector<1x1x8xf32>,
    return
  }
  func.func @transform_0(%arg0: i32) -> (i32, i32) {
    %c0_i32 = arith.constant 0 : i32
    %c0_i32_0 = arith.constant 0 : i32
    return %arg0, %c0_i32 : i32, i32
  }
  func.func @transform_1(%arg0: i32) -> (i32, i32) {
    %c0_i32 = arith.constant 0 : i32
    %c0_i32_0 = arith.constant 0 : i32
    %c0_i32_1 = arith.constant 0 : i32
    return %c0_i32, %c0_i32_0 : i32, i32
  }
  func.func @transform_2(%arg0: i32) -> (i32, i32) {
    %c0_i32 = arith.constant 0 : i32
    %c0_i32_0 = arith.constant 0 : i32
    %c0_i32_1 = arith.constant 0 : i32
    return %c0_i32, %c0_i32_0 : i32, i32
  }
  func.func @transform_3(%arg0: i32) -> (i32, i32) {
    %c0_i32 = arith.constant 0 : i32
    %c0_i32_0 = arith.constant 0 : i32
    %c0_i32_1 = arith.constant 0 : i32
    return %c0_i32, %c0_i32_0 : i32, i32
  }
  func.func @transform_4(%arg0: i32) -> (i32, i32) {
    %c0_i32 = arith.constant 0 : i32
    %c0_i32_0 = arith.constant 0 : i32
    %c0_i32_1 = arith.constant 0 : i32
    return %c0_i32, %c0_i32_0 : i32, i32
  }
  func.func @transform_5(%arg0: i32) -> (i32, i32) {
    %c0_i32 = arith.constant 0 : i32
    %c0_i32_0 = arith.constant 0 : i32
    %c0_i32_1 = arith.constant 0 : i32
    return %c0_i32, %c0_i32_0 : i32, i32
  }
  func.func @transform_6(%arg0: i32) -> (i32, i32) {
    %c0_i32 = arith.constant 0 : i32
    %c0_i32_0 = arith.constant 0 : i32
    %c0_i32_1 = arith.constant 0 : i32
    return %c0_i32, %c0_i32_0 : i32, i32
  }
  func.func @transform_7(%arg0: i32) -> (i32, i32, i32) {
    %c0_i32 = arith.constant 0 : i32
    %c0_i32_0 = arith.constant 0 : i32
    %c0_i32_1 = arith.constant 0 : i32
    return %arg0, %c0_i32, %c0_i32_0 : i32, i32, i32
  }
}

</mosaic_0001>

<bundles_post_ra>
// kernel: tpu_custom_call.1
= control target key start
LH: loop header
LB: loop body
LE: loop exit
PB: predicated region body
PF: predicated region fallthrough
CT: control target
= control target key end

     0   :  { %s542_s0 = inlined_call_operand.vmem [shape: f32[8,64], index: 0, kind: input, shape index: {}]   ;;  %s543_s1 = inlined_call_operand.vmem [shape: f32[64,32], index: 1, kind: input, shape index: {}]   ;;  %s544_s2 = inlined_call_operand.vmem [shape: f32[1,32], index: 2, kind: input, shape index: {}]   ;;  %s545_s3 = inlined_call_operand.vmem [shape: f32[32,16], index: 3, kind: input, shape index: {}]   ;;  %s546_s4 = inlined_call_operand.vmem [shape: f32[1,16], index: 4, kind: input, shape index: {}]   ;;  %s547_s5 = inlined_call_operand.vmem [shape: f32[1,16], index: 5, kind: input, shape index: {}]   ;;  %s548_s6 = inlined_call_operand.<no memory space> [shape: f32[1,1], index: 6, kind: input, shape index: {}]   ;;  %s549_s7 = inlined_call_operand.hbm [shape: f32[1,1,8], index: 7, kind: output, shape index: {}]  }
   0x1   :  { %v12_v0 = vstv %s548_s6 }
   0x2   :  { %13 = vst [vmem:[#allocation2] sm:$0x1] %v12_v0 }
   0x3   :  { %v30_v1 = vld [vmem:[%s543_s1] sm:$0xff]  ;;  %v31_v2 = vld [vmem:[%s543_s1 + $0x8] sm:$0xff]  ;;  %v32_v3 = vld [vmem:[%s543_s1 + $0x10] sm:$0xff]  ;;  %v431_v4 = vmov 0.0|0.0   ;;  %vm432_vm0 = vmmov 0   ;;  %v433_v7 = vmov 0.0  }
   0x4   :  { %377 = vmatprep.subr.bf16.mxu0 %v431_v4  ;;  %v378_v5 = vpack.c.bf16 %v31_v2, %v30_v1  ;;  %v33_v6 = vld [vmem:[%s543_s1 + $0x18] sm:$0xff]  ;;  %358 = vmatprep.mubr.msk.f32.mxu0 %vm432_vm0, %v433_v7 }
   0x5   :  { %389 = vmatprep.subr.bf16.mxu1 %v431_v4  ;;  %369 = vmatprep.mubr.msk.f32.mxu1 %vm432_vm0, %v433_v7  ;;  %v381_v8 = vpack.c.bf16 %v33_v6, %v32_v3 }
   0x6   :  { %379 = vmatpush3.bf16.msra.mxu0 %v378_v5 }
   0x7   :  { %14 = vsyncpa [#allocation4], 0  ;;  %380 = vmatprep.subr.bf16.mxu0 %v431_v4  ;;  %v34_v9 = vld [vmem:[%s543_s1 + $0x20] sm:$0xff]  ;;  %v35_v10 = vld [vmem:[%s543_s1 + $0x28] sm:$0xff]  ;;  %vm45_vm1 = vcmask 523264   ;;  %vm134_vm2 = vcmask 261120   ;;  %v219_v41 = vlaneseq }
   0x8   :  { %v384_v11 = vpack.c.bf16 %v35_v10, %v34_v9  ;;  %v36_v12 = vld [vmem:[%s543_s1 + $0x30] sm:$0xff]  ;;  %v37_v13 = vld [vmem:[%s543_s1 + $0x38] sm:$0xff]  ;;  %v29_v15 = vld [vmem:[%s542_s0] sm:$0xff]  ;;  %v434_v31 = vmov 0   ;;  %vm223_vm3 = vcmask 130048   ;;  %vm304_vm4 = vcmask 57344  }
   0x9   :  { %v387_v14 = vpack.c.bf16 %v37_v13, %v36_v12  ;;  %v123_v16 = vld [vmem:[%s545_s3] sm:$0xff]  ;;  %v124_v17 = vld [vmem:[%s545_s3 + $0x8] sm:$0xff]  ;;  %v125_v19 = vld [vmem:[%s545_s3 + $0x10] sm:$0xff]  ;;  %400 = vset.pattern.permute.xlu0 %v434_v31  ;;  %v220_v42 = vshrl.u32 %v219_v41, 7 }
   0xa   :  { %382 = vmatpush3.bf16.msra.mxu0 %v381_v8  ;;  %v390_v18 = vpack.c.bf16 %v124_v17, %v123_v16  ;;  %v126_v20 = vld [vmem:[%s545_s3 + $0x18] sm:$0xff]  ;;  %v320_v22 = vld [vmem:[%s544_s2] ss:$0 sm:$0xff] }
   0xb   :  { %383 = vmatprep.subr.bf16.mxu0 %v431_v4  ;;  %v393_v21 = vpack.c.bf16 %v126_v20, %v125_v19  ;;  %v213_v30 = vld [vmem:[#allocation2] sm:$0x1]  ;;  %v221_v43 = vsub.s32 0, %v220_v42 }
   0xc   :  { %391 = vmatpush3.bf16.msra.mxu1 %v390_v18  ;;  %216 = vperm.xlu0 %400, %v213_v30   ;;  %v322_v32 = vld [vmem:[%s546_s4] ss:$0 sm:$0xff]  ;;  %s435_s4 = smov [#allocation3]  }
   0xd   :  { %392 = vmatprep.subr.bf16.mxu1 %v431_v4  ;;  %v212_v40 = vld [vmem:[%s547_s5] sm:$0x1]  ;;  %s312_s30 = sshll.u32 %s435_s4, 4  ;;  %s313_s30 = int_to_ptr.vmem [resolvable:$true] %s312_s30 }
   0xe   :  { %385 = vmatpush3.bf16.msra.mxu0 %v384_v11  ;;  %s407_s5 = scalar_lea.vmem %s313_s30, 16  ;;  %s411_s8 = scalar_lea.vmem %s313_s30, 32 }
   0xf   :  { %386 = vmatprep.subr.bf16.mxu0 %v431_v4  ;;  %p408_p0 = scmp.ne.s32.totalorder %s313_s30, %s407_s5  ;;  %p412_p1 = scmp.lt.s32.totalorder %s313_s30, %s313_s30 }
  0x10   :  { %394 = vmatpush3.bf16.msra.mxu1 %v393_v21  ;;  %p413_p2 = scmp.lt.s32.totalorder %s411_s8, %s407_s5 }
  0x11   :  { %372 = vmatprep.subr.mxu1 %v433_v7 }
  0x12   :  { %388 = vmatpush3.bf16.msra.mxu0 %v387_v14  ;;  %p414_p3 = por %p413_p2, %p412_p1 }
  0x14   :  { %p415_p4 = pnand %p414_p3, %p408_p0 }
  0x15   :  { %359 = vmatmul.mubr.msk.f32.vlgmr.msra.gmra.mrb[0].mxu0 %vm45_vm1, %v29_v15 }
  0x8b   :  { %v217_v44 = vpop.permute.xlu0 %216 }
  0x8c   :  { %v222_v45 = vrot.slane %v217_v44, %v221_v43 }
  0xe8   :  { %v115_v23 = vpop.f32.mrb[0].mxu0 }
  0xe9   :  { %v116_v24 = vadd.f32 %v320_v22, %v115_v23  ;;  %v360_v25 = vpop.f32.mrb[1].mxu0 }
  0xeb   :  { %v119_v26 = vmul.f32 0.5, %v116_v24 }
  0xed   :  { %401 = vtanh.f32 %v119_v26 }
  0xf7   :  { %v402_v27 = vpop.eup %401 }
  0xf8   :  { %v121_v28 = vmul.f32 0.5, %v402_v27 }
  0xfa   :  { %v122_v29 = vadd.f32 0.5, %v121_v28 }
  0xfc   :  { %370 = vmatmul.mubr.msk.f32.vlgmr.msra.gmra.mrb[0].mxu1 %vm134_vm2, %v122_v29 }
  0xfd   :  { %374 = vmatprep.mubr.msk.f32.mxu1 %vm432_vm0, %v433_v7 }
 0x1cf   :  { %v204_v33 = vpop.f32.mrb[0].mxu1 }
 0x1d0   :  { %v205_v34 = vadd.f32 %v322_v32, %v204_v33  ;;  %v371_v35 = vpop.f32.mrb[1].mxu1 }
 0x1d2   :  { %v208_v36 = vmul.f32 0.5, %v205_v34 }
 0x1d4   :  { %403 = vtanh.f32 %v208_v36 }
 0x1de   :  { %v404_v37 = vpop.eup %403 }
 0x1df   :  { %v210_v38 = vmul.f32 0.5, %v404_v37 }
 0x1e1   :  { %v211_v39 = vadd.f32 0.5, %v210_v38 }
 0x1e3   :  { %373 = vmatpush3.xpose.msk.msra.mxu1 %vm223_vm3, %v211_v39 }
 0x1e6   :  { %375 = vmatmul.mubr.msk.f32.vlgmr.msra.gmra.mrb[2].mxu1 %vm223_vm3, %v212_v40 }
 0x2b9   :  { %v296_v46 = vpop.f32.mrb[2].mxu1 }
 0x2ba   :  { %v297_v47 = vadd.f32 %v296_v46, %v222_v45  ;;  %v376_v48 = vpop.f32.mrb[3].mxu1 }
 0x2bc   :  { %v300_v49 = vmul.f32 0.5, %v297_v47 }
 0x2be   :  { %405 = vtanh.f32 %v300_v49 }
 0x2c8   :  { %v406_v50 = vpop.eup %405 }
 0x2c9   :  { %v302_v51 = vmul.f32 0.5, %v406_v50 }
 0x2cb   :  { %v303_v52 = vadd.f32 0.5, %v302_v51 }
 0x2cd   :  { %305 = vst.msk [vmem:[#allocation3] sm:$0x1] %vm304_vm4, %v303_v52 }
 0x2ce   :  { %418 = shalt.err (!%p415_p4)
}
 0x2cf   :  { %s419_s6 = scalar_lea.hbm %s549_s7, 16 }
 0x2d0   :  { %p420_p5 = scmp.ne.s32.totalorder %s549_s7, %s419_s6  ;;  %p423_p6 = scmp.lt.u32.totalorder %s419_s6, %s549_s7 }
 0x2d2   :  { %p425_p7 = pnand %p423_p6, %p420_p5 }
 0x2d4   :  { %428 = shalt.err (!%p425_p7)
}
 0x2d5   :  { %315 = dma.vmem_to_hbm [thread:$0]  %s313_s30, 16, %s549_s7, [#allocation4]  }
 0x2d6   :  { %429 = dma.done.wait [#allocation4], 16  }
 0x2d7   :  { %430 = vsyncadd [#allocation4], 4294967280 }
 0x2d8   :  { %319 = vsyncpa [#allocation4], 1 }

</bundles_post_ra>
